<compile_context>
chip_gen: v7x
topology: tpu7x:2x2x1
jax: 0.10.0
libtpu: 0.0.40
codegen_flags: <defaults>
</compile_context>

<pallas_src>
import jax
import jax.numpy as jnp
from jax.experimental import pallas as pl
from jax.experimental.pallas import tpu as pltpu


# ----------------------------------------------------------------------------
# Pallas kernel: full GNNClassifier forward (eval mode)
# ----------------------------------------------------------------------------
def _gnn_forward_kernel(a_ref, x_ref, w1s_ref, b1_ref, w2s_ref, b2_ref,
                        out_ref, cat1_ref, cat2_ref):
    f = x_ref.shape[1]          # in_features
    h_dim = w1s_ref.shape[1]    # hidden_dim

    a = a_ref[...]              # (N, N) bf16 row-normalized adjacency
    x = x_ref[...]              # (N, F) bf16

    # ---- SAGEConv 1:  h = relu([A@x | x] @ [W1l ; W1r] + b1)  (K = 2F) ----
    agg1 = jnp.dot(a, x, preferred_element_type=jnp.float32)            # (N, F) f32 acc
    cat1_ref[:, :f] = agg1.astype(jnp.bfloat16)
    cat1_ref[:, f:] = x
    h_pre = jnp.dot(cat1_ref[...], w1s_ref[...],
                    preferred_element_type=jnp.float32) + b1_ref[...]   # (N, H) f32
    hid = jnp.maximum(h_pre, 0.0)                                       # ReLU (f32 VPU)

    # ---- Dropout ----
    # TODO(synk): training-mode dropout (p=0.6) omitted; eval-mode dropout is identity.
    hid_b = hid.astype(jnp.bfloat16)

    # ---- SAGEConv 2:  out = [A@h | h] @ [W2l ; W2r] + b2  (K = 2H, 128-lane out) ----
    agg2 = jnp.dot(a, hid_b, preferred_element_type=jnp.float32)        # (N, H) f32
    cat2_ref[:, :h_dim] = agg2.astype(jnp.bfloat16)
    cat2_ref[:, h_dim:] = hid_b
    out_ref[...] = (jnp.dot(cat2_ref[...], w2s_ref[...],
                            preferred_element_type=jnp.float32)
                    + b2_ref[...])                                      # (N, 128) f32


# ----------------------------------------------------------------------------
# Wrapper: weight stacking, class-dim lane padding, bf16 cast, pallas_call
# ----------------------------------------------------------------------------
@jax.jit
def gnn_classifier_forward(a, x, w1l, w1r, b1, w2l, w2r, b2):
    n, f = x.shape
    h = w1l.shape[1]
    c = w2l.shape[1]
    c_pad = max(128, ((c + 127) // 128) * 128)   # lane-dense output width

    # Stack lin_l / lin_r along the contraction dim -> one K=2F / K=2H matmul per layer.
    w1s = jnp.concatenate([w1l, w1r], axis=0)                                # (2F, H)
    w2l_p = jnp.zeros((h, c_pad), jnp.float32).at[:, :c].set(w2l)
    w2r_p = jnp.zeros((h, c_pad), jnp.float32).at[:, :c].set(w2r)
    w2s = jnp.concatenate([w2l_p, w2r_p], axis=0)                            # (2H, C_pad)
    b2p = jnp.zeros((1, c_pad), jnp.float32).at[:, :c].set(b2)

    # bf16 operands, f32 accumulation inside the kernel.
    a_b = a.astype(jnp.bfloat16)
    x_b = x.astype(jnp.bfloat16)
    w1s_b = w1s.astype(jnp.bfloat16)
    w2s_b = w2s.astype(jnp.bfloat16)

    out_pad = pl.pallas_call(
        _gnn_forward_kernel,
        out_shape=jax.ShapeDtypeStruct((n, c_pad), jnp.float32),
        # Single grid point; everything fits in VMEM at these sizes.
        in_specs=[pl.BlockSpec(memory_space=pltpu.VMEM)] * 6,
        out_specs=pl.BlockSpec(memory_space=pltpu.VMEM),
        scratch_shapes=[pltpu.VMEM((n, 2 * f), jnp.bfloat16),   # [A@x | x]
                        pltpu.VMEM((n, 2 * h), jnp.bfloat16)],  # [A@h | h]
    )(a_b, x_b, w1s_b, b1, w2s_b, b2p)

    return out_pad[:, :c]


# ----------------------------------------------------------------------------
# Glue: dense mean-aggregation matrix from edge_index (plain JAX, built once)
# ----------------------------------------------------------------------------
def build_mean_aggregation_matrix(edge_index, num_nodes):
    """edge_index: (2, E) int32, row 0 = source, row 1 = target (PyG convention)."""
    src, dst = edge_index[0], edge_index[1]
    adj = jnp.zeros((num_nodes, num_nodes), jnp.float32)
    adj = adj.at[dst, src].add(1.0)                     # A[i, j] = #edges j->i
    deg = adj.sum(axis=1, keepdims=True)                # in-degree per target node
    return adj / jnp.maximum(deg, 1.0)                  # row-normalize -> mean


# ----------------------------------------------------------------------------
# Deterministic parameter init (shapes from GNNClassifier.__init__)
# ----------------------------------------------------------------------------
def init_params(key, in_features, hidden_dim, num_classes):
    ks = jax.random.split(key, 4)

    def glorot(k, fan_in, fan_out):
        lim = (6.0 / (fan_in + fan_out)) ** 0.5
        return jax.random.uniform(k, (fan_in, fan_out), jnp.float32, -lim, lim)

    # SAGEConv1: lin_l (neighbors, with bias), lin_r (root, no bias)
    w1l = glorot(ks[0], in_features, hidden_dim)
    w1r = glorot(ks[1], in_features, hidden_dim)
    b1 = jnp.zeros((1, hidden_dim), jnp.float32)
    # SAGEConv2
    w2l = glorot(ks[2], hidden_dim, num_classes)
    w2r = glorot(ks[3], hidden_dim, num_classes)
    b2 = jnp.zeros((1, num_classes), jnp.float32)
    return w1l, w1r, b1, w2l, w2r, b2


# ----------------------------------------------------------------------------
# Pure-JAX reference mirroring the kernel's numerics (bf16 operands, f32 acc)
# ----------------------------------------------------------------------------
def reference_forward(a, x, w1l, w1r, b1, w2l, w2r, b2):
    hp = jax.lax.Precision.HIGHEST

    def bf(v):  # round to bf16, compute in f32 (products then exact, f32 accumulate)
        return v.astype(jnp.bfloat16).astype(jnp.float32)

    a_, x_ = bf(a), bf(x)
    agg1 = jnp.dot(a_, x_, precision=hp)
    h_pre = (jnp.dot(bf(agg1), bf(w1l), precision=hp)
             + jnp.dot(x_, bf(w1r), precision=hp) + b1)
    hid = jnp.maximum(h_pre, 0.0)
    hid_b = bf(hid)
    agg2 = jnp.dot(a_, hid_b, precision=hp)
    return (jnp.dot(bf(agg2), bf(w2l), precision=hp)
            + jnp.dot(hid_b, bf(w2r), precision=hp) + b2)


if __name__ == "__main__":
    # Small, module-consistent shapes
    num_nodes = 64
    in_features = 64
    hidden_dim = 64
    num_classes = 8
    k_neighbors = 5

    key = jax.random.PRNGKey(0)
    k_x, k_e, k_p = jax.random.split(key, 3)

    # Node features
    x = jax.random.normal(k_x, (num_nodes, in_features), jnp.float32)

    # Deterministic synthetic k-NN-like edge_index (2, E): node i -> k random targets
    src = jnp.repeat(jnp.arange(num_nodes, dtype=jnp.int32), k_neighbors)
    dst = jax.random.randint(k_e, (num_nodes * k_neighbors,), 0, num_nodes, jnp.int32)
    edge_index = jnp.stack([src, dst], axis=0)

    # A built once and reused (amortized outside the hot path).
    a = build_mean_aggregation_matrix(edge_index, num_nodes)
    params = init_params(k_p, in_features, hidden_dim, num_classes)

    out = gnn_classifier_forward(a, x, *params)
    out = jax.block_until_ready(out)

    ref = reference_forward(a, x, *params)
    assert out.shape == (num_nodes, num_classes)
    max_err = float(jnp.max(jnp.abs(out - ref)))
    assert jnp.allclose(out, ref, atol=2e-3, rtol=2e-3), f"mismatch vs reference (max abs err {max_err})"

    print("KERNEL_OK")
</pallas_src>

<mosaic_0001>
module attributes {stable_mosaic.version = 11 : i64} {
  func.func @_gnn_forward_kernel(%arg0: memref<64x64xbf16, #tpu.memory_space<vmem>>, %arg1: memref<64x64xbf16, #tpu.memory_space<vmem>>, %arg2: memref<128x64xbf16, #tpu.memory_space<vmem>>, %arg3: memref<1x64xf32, #tpu.memory_space<vmem>>, %arg4: memref<128x128xbf16, #tpu.memory_space<vmem>>, %arg5: memref<1x128xf32, #tpu.memory_space<vmem>>, %arg6: memref<64x128xf32, #tpu.memory_space<vmem>>, %arg7: memref<64x128xbf16, #tpu.memory_space<vmem>>, %arg8: memref<64x128xbf16, #tpu.memory_space<vmem>>) attributes {dimension_semantics = [], scalar_prefetch = 0 : i64, scratch_operands = 2 : i64, tpu.core_type = #tpu.core_type<tc>} {
    %c0 = arith.constant 0 : index
    %c0_0 = arith.constant 0 : index
    %0 = vector.load %arg0[%c0, %c0_0] : memref<64x64xbf16, #tpu.memory_space<vmem>>, vector<64x64xbf16>
    %c0_1 = arith.constant 0 : index
    %c0_2 = arith.constant 0 : index
    %1 = vector.load %arg1[%c0_1, %c0_2] : memref<64x64xbf16, #tpu.memory_space<vmem>>, vector<64x64xbf16>
    %cst = arith.constant dense<0.000000e+00> : vector<64x64xf32>
    %2 = tpu.matmul %0, %1, %cst {dimension_numbers = #tpu.dot_dimension_numbers<[1], [0], [0], [1], [0, 0, 1, 1], [], []>} : vector<64x64xbf16>, vector<64x64xbf16>, vector<64x64xf32> -> vector<64x64xf32>
    %3 = arith.truncf %2 : vector<64x64xf32> to vector<64x64xbf16>
    %c0_3 = arith.constant 0 : index
    %c0_4 = arith.constant 0 : index
    %4 = vector.load %arg7[%c0_3, %c0_4] : memref<64x128xbf16, #tpu.memory_space<vmem>>, vector<64x64xbf16>
    tpu.vector_store %arg7[%c0_3, %c0_4], %3 {strides = array<i32>} : memref<64x128xbf16, #tpu.memory_space<vmem>>, vector<64x64xbf16>,
    %c0_5 = arith.constant 0 : index
    %c64 = arith.constant 64 : index
    %5 = vector.load %arg7[%c0_5, %c64] : memref<64x128xbf16, #tpu.memory_space<vmem>>, vector<64x64xbf16>
    tpu.vector_store %arg7[%c0_5, %c64], %1 {strides = array<i32>} : memref<64x128xbf16, #tpu.memory_space<vmem>>, vector<64x64xbf16>,
    %c0_6 = arith.constant 0 : index
    %c0_7 = arith.constant 0 : index
    %6 = vector.load %arg7[%c0_6, %c0_7] : memref<64x128xbf16, #tpu.memory_space<vmem>>, vector<64x128xbf16>
    %c0_8 = arith.constant 0 : index
    %c0_9 = arith.constant 0 : index
    %7 = vector.load %arg2[%c0_8, %c0_9] : memref<128x64xbf16, #tpu.memory_space<vmem>>, vector<128x64xbf16>
    %cst_10 = arith.constant dense<0.000000e+00> : vector<64x64xf32>
    %8 = tpu.matmul %6, %7, %cst_10 {dimension_numbers = #tpu.dot_dimension_numbers<[1], [0], [0], [1], [0, 0, 1, 1], [], []>} : vector<64x128xbf16>, vector<128x64xbf16>, vector<64x64xf32> -> vector<64x64xf32>
    %c0_11 = arith.constant 0 : index
    %c0_12 = arith.constant 0 : index
    %9 = vector.load %arg3[%c0_11, %c0_12] : memref<1x64xf32, #tpu.memory_space<vmem>>, vector<1x64xf32>
    %10 = vector.broadcast %9 : vector<1x64xf32> to vector<64x64xf32>
    %11 = arith.addf %8, %10 : vector<64x64xf32>
    %cst_13 = arith.constant 0.000000e+00 : f32
    %12 = vector.broadcast %cst_13 : f32 to vector<64x64xf32>
    %13 = arith.maximumf %11, %12 : vector<64x64xf32>
    %14 = arith.truncf %13 : vector<64x64xf32> to vector<64x64xbf16>
    %cst_14 = arith.constant dense<0.000000e+00> : vector<64x64xf32>
    %15 = tpu.matmul %0, %14, %cst_14 {dimension_numbers = #tpu.dot_dimension_numbers<[1], [0], [0], [1], [0, 0, 1, 1], [], []>} : vector<64x64xbf16>, vector<64x64xbf16>, vector<64x64xf32> -> vector<64x64xf32>
    %16 = arith.truncf %15 : vector<64x64xf32> to vector<64x64xbf16>
    %c0_15 = arith.constant 0 : index
    %c0_16 = arith.constant 0 : index
    %17 = vector.load %arg8[%c0_15, %c0_16] : memref<64x128xbf16, #tpu.memory_space<vmem>>, vector<64x64xbf16>
    tpu.vector_store %arg8[%c0_15, %c0_16], %16 {strides = array<i32>} : memref<64x128xbf16, #tpu.memory_space<vmem>>, vector<64x64xbf16>,
    %c0_17 = arith.constant 0 : index
    %c64_18 = arith.constant 64 : index
    %18 = vector.load %arg8[%c0_17, %c64_18] : memref<64x128xbf16, #tpu.memory_space<vmem>>, vector<64x64xbf16>
    tpu.vector_store %arg8[%c0_17, %c64_18], %14 {strides = array<i32>} : memref<64x128xbf16, #tpu.memory_space<vmem>>, vector<64x64xbf16>,
    %c0_19 = arith.constant 0 : index
    %c0_20 = arith.constant 0 : index
    %19 = vector.load %arg8[%c0_19, %c0_20] : memref<64x128xbf16, #tpu.memory_space<vmem>>, vector<64x128xbf16>
    %c0_21 = arith.constant 0 : index
    %c0_22 = arith.constant 0 : index
    %20 = vector.load %arg4[%c0_21, %c0_22] : memref<128x128xbf16, #tpu.memory_space<vmem>>, vector<128x128xbf16>
    %cst_23 = arith.constant dense<0.000000e+00> : vector<64x128xf32>
    %21 = tpu.matmul %19, %20, %cst_23 {dimension_numbers = #tpu.dot_dimension_numbers<[1], [0], [0], [1], [0, 0, 1, 1], [], []>} : vector<64x128xbf16>, vector<128x128xbf16>, vector<64x128xf32> -> vector<64x128xf32>
    %c0_24 = arith.constant 0 : index
    %c0_25 = arith.constant 0 : index
    %22 = vector.load %arg5[%c0_24, %c0_25] : memref<1x128xf32, #tpu.memory_space<vmem>>, vector<1x128xf32>
    %23 = vector.broadcast %22 : vector<1x128xf32> to vector<64x128xf32>
    %24 = arith.addf %21, %23 : vector<64x128xf32>
    %c0_26 = arith.constant 0 : index
    %c0_27 = arith.constant 0 : index
    %25 = vector.load %arg6[%c0_26, %c0_27] : memref<64x128xf32, #tpu.memory_space<vmem>>, vector<64x128xf32>
    tpu.vector_store %arg6[%c0_26, %c0_27], %24 {strides = array<i32>} : memref<64x128xf32, #tpu.memory_space<vmem>>, vector<64x128xf32>,
    return
  }
}

</mosaic_0001>

<bundles_post_ra>
// kernel: gnn_classifier_forward.1
= control target key start
LH: loop header
LB: loop body
LE: loop exit
PB: predicated region body
PF: predicated region fallthrough
CT: control target
= control target key end

     0   :  { %s763_s27 = smov 64   ;;  %vm84_vm0 = vcmask 523264   ;;  %vm182_vm1 = vcmask 1048064   ;;  %s945_s1 = inlined_call_operand.vmem [shape: bf16[64,64], index: 1, kind: input, shape index: {}]   ;;  %s946_s0 = inlined_call_operand.vmem [shape: bf16[64,64], index: 0, kind: input, shape index: {}]   ;;  %s947_s2 = inlined_call_operand.vmem [shape: bf16[128,64], index: 2, kind: input, shape index: {}]   ;;  %s948_s3 = inlined_call_operand.vmem [shape: f32[1,64], index: 3, kind: input, shape index: {}]   ;;  %s949_s4 = inlined_call_operand.vmem [shape: bf16[128,128], index: 4, kind: input, shape index: {}]   ;;  %s950_s5 = inlined_call_operand.vmem [shape: f32[1,128], index: 5, kind: input, shape index: {}]   ;;  %s951_s6 = inlined_call_operand.vmem [shape: f32[64,128], index: 6, kind: output, shape index: {}]  }
   0x1   :  { %v739_v0 = vld [vmem:[%s945_s1] sm:$0xff]   ;;  %v740_v1 = vld [vmem:[%s945_s1 + $0x8] sm:$0xff]   ;;  %v741_v2 = vld [vmem:[%s945_s1 + $0x10] sm:$0xff]  }
   0x2   :  { %658 = vmatprep.subr.bf16.mxu1 %v739_v0  ;;  %170 = vrot.lane.b32.xlu0 %v739_v0, %s763_s27  ;;  %v743_v3 = vld [vmem:[%s946_s0] sm:$0xff]   ;;  %v742_v4 = vld [vmem:[%s945_s1 + $0x18] sm:$0xff]   ;;  %v826_v6 = vld [vmem:[%s946_s0 + $0x8] sm:$0xff]  }
   0x3   :  { %659 = vmatpush3.bf16.msra.mxu1 %v739_v0  ;;  %174 = vrot.lane.b32.xlu1 %v741_v2, %s763_s27  ;;  %v747_v5 = vld [vmem:[%s947_s2] sm:$0xff]   ;;  %v831_v7 = vld [vmem:[%s946_s0 + $0x10] sm:$0xff]   ;;  %v748_v8 = vld [vmem:[%s947_s2 + $0x8] sm:$0xff]  }
   0x4   :  { %660 = vmatprep.subr.bf16.mxu1 %v740_v1  ;;  %666 = vmatprep.mubr.msk.bf16.mxu1 %vm84_vm0, %v743_v3  ;;  %v749_v9 = vld [vmem:[%s947_s2 + $0x10] sm:$0xff]   ;;  %v846_v10 = vld [vmem:[%s946_s0 + $0x18] sm:$0xff]   ;;  %v751_v12 = vld [vmem:[%s947_s2 + $0x20] sm:$0xff]  }
   0x5   :  { %706 = vmatprep.mubr.msk.bf16.mxu0 %vm84_vm0, %v743_v3  ;;  %v750_v11 = vld [vmem:[%s947_s2 + $0x18] sm:$0xff]   ;;  %v752_v13 = vld [vmem:[%s947_s2 + $0x28] sm:$0xff]   ;;  %v753_v14 = vld [vmem:[%s947_s2 + $0x30] sm:$0xff]  }
   0x6   :  { %172 = vrot.lane.b32.xlu0 %v740_v1, %s763_s27  ;;  %v754_v15 = vld [vmem:[%s947_s2 + $0x38] sm:$0xff]   ;;  %v596_v36 = vld [vmem:[%s948_s3] ss:$0 sm:$0xff]  ;;  %v757_v3 = vld [vmem:[%s949_s4 + $0x10] sm:$0xff]  }
   0x7   :  { %661 = vmatpush3.bf16.msra.mxu1 %v740_v1  ;;  %176 = vrot.lane.b32.xlu1 %v742_v4, %s763_s27  ;;  %v755_v1 = vld [vmem:[%s949_s4] sm:$0xff]  }
   0x8   :  { %662 = vmatprep.subr.bf16.mxu1 %v741_v2 }
   0xb   :  { %663 = vmatpush3.bf16.msra.mxu1 %v741_v2  ;;  %v756_v2 = vld [vmem:[%s949_s4 + $0x8] sm:$0xff]  }
   0xc   :  { %664 = vmatprep.subr.bf16.mxu1 %v742_v4 }
   0xf   :  { %665 = vmatpush3.bf16.msra.mxu1 %v742_v4  ;;  %v758_v4 = vld [vmem:[%s949_s4 + $0x18] sm:$0xff]  }
  0x10   :  { %674 = vmatprep.subr.bf16.mxu1 %v747_v5 }
  0x12   :  { %667 = vmatmul.mubr.msk.bf16.vlgmr.msra.gmra.mrb[0].mxu1 %vm84_vm0, %v826_v6 }
  0x13   :  { %670 = vmatprep.mubr.msk.bf16.mxu1 %vm84_vm0, %v831_v7  ;;  %675 = vmatpush3.bf16.msra.mxu1 %v747_v5  ;;  %v759_v5 = vld [vmem:[%s949_s4 + $0x20] sm:$0xff]  }
  0x14   :  { %676 = vmatprep.subr.bf16.mxu1 %v748_v8 }
  0x17   :  { %677 = vmatpush3.bf16.msra.mxu1 %v748_v8  ;;  %v762_v8 = vld [vmem:[%s949_s4 + $0x38] sm:$0xff]  }
  0x18   :  { %678 = vmatprep.subr.bf16.mxu1 %v749_v9 }
  0x1a   :  { %671 = vmatmul.mubr.msk.bf16.gmra.mrb[4].mxu1 %vm84_vm0, %v846_v10 }
  0x1b   :  { %679 = vmatpush3.bf16.msra.mxu1 %v749_v9 }
  0x1c   :  { %680 = vmatprep.subr.bf16.mxu1 %v750_v11 }
  0x1f   :  { %681 = vmatpush3.bf16.msra.mxu1 %v750_v11 }
  0x20   :  { %682 = vmatprep.subr.bf16.mxu1 %v751_v12 }
  0x23   :  { %683 = vmatpush3.bf16.msra.mxu1 %v751_v12 }
  0x24   :  { %684 = vmatprep.subr.bf16.mxu1 %v752_v13 }
  0x27   :  { %685 = vmatpush3.bf16.msra.mxu1 %v752_v13 }
  0x28   :  { %686 = vmatprep.subr.bf16.mxu1 %v753_v14 }
  0x2b   :  { %687 = vmatpush3.bf16.msra.mxu1 %v753_v14 }
  0x2c   :  { %688 = vmatprep.subr.bf16.mxu1 %v754_v15 }
  0x2f   :  { %689 = vmatpush3.bf16.msra.mxu1 %v754_v15 }
  0x74   :  { %v171_v16 = vpop.permute.xlu0 %170 }
  0x75   :  { %v175_v24 = vpop.permute.xlu1 %174 }
  0x78   :  { %v173_v22 = vpop.permute.xlu0 %172 }
  0x79   :  { %v177_v30 = vpop.permute.xlu1 %176 }
  0xe5   :  { %v668_v17 = vpop.f32.mrb[0].mxu1 }
  0xe6   :  { %v131_v18 = vpop.f32.mrb[1].mxu1 }
  0xe7   :  { %v669_v19 = vpop.f32.mrb[2].mxu1 }
  0xe8   :  { %v163_v20 = vpack.c.bf16 %v669_v19, %v668_v17  ;;  %v134_v21 = vpop.f32.mrb[3].mxu1 }
  0xe9   :  { %v162_v23 = vpack.c.bf16 %v134_v21, %v131_v18 }
  0xea   :  { %167 = vst.msk [vmem:[#allocation2 + $0x8] sm:$0xff] %vm84_vm0, %v163_v20 }
  0xeb   :  { %166 = vst.msk [vmem:[#allocation2] sm:$0xff] %vm84_vm0, %v162_v23 }
  0xec   :  { %184 = vst.msk [vmem:[#allocation2 + $0x8] sm:$0xff] %vm182_vm1, %v173_v22  ;;  %183 = vst.msk [vmem:[#allocation2] sm:$0xff] %vm182_vm1, %v171_v16 }
  0xed   :  { %v672_v25 = vpop.f32.mrb[4].mxu1 }
  0xee   :  { %v147_v26 = vpop.f32.mrb[5].mxu1 }
  0xef   :  { %v673_v27 = vpop.f32.mrb[6].mxu1 }
  0xf0   :  { %v165_v28 = vpack.c.bf16 %v673_v27, %v672_v25  ;;  %v150_v29 = vpop.f32.mrb[7].mxu1 }
  0xf1   :  { %v164_v31 = vpack.c.bf16 %v150_v29, %v147_v26  ;;  %v609_v29 = vld [vmem:[%s950_s5] ss:$0 sm:$0xff] }
  0xf2   :  { %169 = vst.msk [vmem:[#allocation2 + $0x18] sm:$0xff] %vm84_vm0, %v165_v28 }
  0xf3   :  { %v188_v32 = vld [vmem:[#allocation2 + $0x8] sm:$0xff]  ;;  %168 = vst.msk [vmem:[#allocation2 + $0x10] sm:$0xff] %vm84_vm0, %v164_v31  ;;  %v187_v33 = vld [vmem:[#allocation2] sm:$0xff] }
  0xf4   :  { %186 = vst.msk [vmem:[#allocation2 + $0x18] sm:$0xff] %vm182_vm1, %v177_v30  ;;  %185 = vst.msk [vmem:[#allocation2 + $0x10] sm:$0xff] %vm182_vm1, %v175_v24  ;;  %690 = vmatprep.mubr.bf16.mxu1 %v187_v33 }
  0xf5   :  { %691 = vmatmul.mubr.bf16.vlgmr.msra.gmra.mrb[8].mxu1 %v188_v32 }
  0xfb   :  { %v190_v34 = vld [vmem:[#allocation2 + $0x18] sm:$0xff]  ;;  %v189_v35 = vld [vmem:[#allocation2 + $0x10] sm:$0xff] }
  0xfc   :  { %694 = vmatprep.mubr.bf16.mxu1 %v189_v35 }
  0xfd   :  { %695 = vmatmul.mubr.bf16.gmra.mrb[12].mxu1 %v190_v34 }
 0x1c8   :  { %v692_v37 = vpop.f32.mrb[8].mxu1 }
 0x1c9   :  { %v305_v38 = vadd.f32 %v692_v37, %v596_v36  ;;  %v296_v39 = vpop.f32.mrb[9].mxu1 }
 0x1ca   :  { %v297_v40 = vadd.f32 %v596_v36, %v296_v39  ;;  %v693_v41 = vpop.f32.mrb[10].mxu1 }
 0x1cb   :  { %v308_v42 = vadd.f32 %v693_v41, %v596_v36  ;;  %v299_v43 = vpop.f32.mrb[11].mxu1  ;;  %v329_v45 = vmax.f32 %v305_v38, 0.0 }
 0x1cc   :  { %v300_v44 = vadd.f32 %v596_v36, %v299_v43  ;;  %v327_v47 = vmax.f32 %v297_v40, 0.0 }
 0x1cd   :  { %v330_v46 = vmax.f32 %v308_v42, 0.0 }
 0x1ce   :  { %v328_v48 = vmax.f32 %v300_v44, 0.0 }
 0x1cf   :  { %v336_v49 = vpack.c.bf16 %v330_v46, %v329_v45 }
 0x1d0   :  { %v335_v50 = vpack.c.bf16 %v328_v48, %v327_v47  ;;  %v696_v51 = vpop.f32.mrb[12].mxu1 }
 0x1d1   :  { %v321_v52 = vadd.f32 %v696_v51, %v596_v36  ;;  %418 = vrot.lane.b32.xlu1 %v336_v49, %s763_s27  ;;  %v312_v53 = vpop.f32.mrb[13].mxu1 }
 0x1d2   :  { %v313_v54 = vadd.f32 %v596_v36, %v312_v53  ;;  %416 = vrot.lane.b32.xlu0 %v335_v50, %s763_s27  ;;  %v697_v55 = vpop.f32.mrb[14].mxu1  ;;  %698 = vmatprep.subr.bf16.mxu0 %v335_v50 }
 0x1d3   :  { %v324_v56 = vadd.f32 %v697_v55, %v596_v36  ;;  %v315_v57 = vpop.f32.mrb[15].mxu1  ;;  %699 = vmatpush3.bf16.msra.mxu0 %v335_v50  ;;  %v333_v59 = vmax.f32 %v321_v52, 0.0 }
 0x1d4   :  { %v316_v58 = vadd.f32 %v596_v36, %v315_v57  ;;  %700 = vmatprep.subr.bf16.mxu0 %v336_v49  ;;  %v331_v61 = vmax.f32 %v313_v54, 0.0 }
 0x1d5   :  { %v334_v60 = vmax.f32 %v324_v56, 0.0 }
 0x1d6   :  { %v332_v62 = vmax.f32 %v316_v58, 0.0 }
 0x1d7   :  { %v338_v63 = vpack.c.bf16 %v334_v60, %v333_v59  ;;  %701 = vmatpush3.bf16.msra.mxu0 %v336_v49 }
 0x1d8   :  { %v337_v0 = vpack.c.bf16 %v332_v62, %v331_v61 }
 0x1d9   :  { %422 = vrot.lane.b32.xlu1 %v338_v63, %s763_s27 }
 0x1da   :  { %420 = vrot.lane.b32.xlu0 %v337_v0, %s763_s27  ;;  %702 = vmatprep.subr.bf16.mxu0 %v337_v0 }
 0x1db   :  { %703 = vmatpush3.bf16.msra.mxu0 %v337_v0 }
 0x1dc   :  { %704 = vmatprep.subr.bf16.mxu0 %v338_v63 }
 0x1df   :  { %705 = vmatpush3.bf16.msra.mxu0 %v338_v63 }
 0x1e0   :  { %714 = vmatprep.subr.bf16.mxu0 %v755_v1 }
 0x1e2   :  { %707 = vmatmul.mubr.msk.bf16.vlgmr.msra.gmra.mrb[0].mxu0 %vm84_vm0, %v826_v6  ;;  %v760_v6 = vld [vmem:[%s949_s4 + $0x28] sm:$0xff]  }
 0x1e3   :  { %710 = vmatprep.mubr.msk.bf16.mxu0 %vm84_vm0, %v831_v7  ;;  %715 = vmatpush3.bf16.msra.mxu0 %v755_v1  ;;  %v761_v7 = vld [vmem:[%s949_s4 + $0x30] sm:$0xff]  }
 0x1e4   :  { %716 = vmatprep.subr.bf16.mxu0 %v756_v2 }
 0x1e7   :  { %717 = vmatpush3.bf16.msra.mxu0 %v756_v2 }
 0x1e8   :  { %718 = vmatprep.subr.bf16.mxu0 %v757_v3 }
 0x1ea   :  { %711 = vmatmul.mubr.msk.bf16.gmra.mrb[4].mxu0 %vm84_vm0, %v846_v10 }
 0x1eb   :  { %719 = vmatpush3.bf16.msra.mxu0 %v757_v3 }
 0x1ec   :  { %720 = vmatprep.subr.bf16.mxu0 %v758_v4 }
 0x1ef   :  { %721 = vmatpush3.bf16.msra.mxu0 %v758_v4 }
 0x1f0   :  { %722 = vmatprep.subr.bf16.mxu0 %v759_v5 }
 0x1f3   :  { %723 = vmatpush3.bf16.msra.mxu0 %v759_v5 }
 0x1f4   :  { %724 = vmatprep.subr.bf16.mxu0 %v760_v6 }
 0x1f7   :  { %725 = vmatpush3.bf16.msra.mxu0 %v760_v6 }
 0x1f8   :  { %726 = vmatprep.subr.bf16.mxu0 %v761_v7 }
 0x1fb   :  { %727 = vmatpush3.bf16.msra.mxu0 %v761_v7 }
 0x1fc   :  { %728 = vmatprep.subr.bf16.mxu0 %v762_v8 }
 0x1ff   :  { %729 = vmatpush3.bf16.msra.mxu0 %v762_v8 }
 0x243   :  { %v419_v15 = vpop.permute.xlu1 %418 }
 0x244   :  { %v417_v16 = vpop.permute.xlu0 %416 }
 0x24b   :  { %v423_v23 = vpop.permute.xlu1 %422 }
 0x24c   :  { %v421_v24 = vpop.permute.xlu0 %420 }
 0x2b5   :  { %v708_v9 = vpop.f32.mrb[0].mxu0 }
 0x2b6   :  { %v373_v10 = vpop.f32.mrb[1].mxu0 }
 0x2b7   :  { %v709_v11 = vpop.f32.mrb[2].mxu0 }
 0x2b8   :  { %v405_v12 = vpack.c.bf16 %v709_v11, %v708_v9  ;;  %v376_v13 = vpop.f32.mrb[3].mxu0 }
 0x2b9   :  { %v404_v14 = vpack.c.bf16 %v376_v13, %v373_v10 }
 0x2ba   :  { %409 = vst.msk [vmem:[#allocation3 + $0x8] sm:$0xff] %vm84_vm0, %v405_v12 }
 0x2bb   :  { %429 = vst.msk [vmem:[#allocation3 + $0x8] sm:$0xff] %vm182_vm1, %v419_v15 }
 0x2bc   :  { %408 = vst.msk [vmem:[#allocation3] sm:$0xff] %vm84_vm0, %v404_v14 }
 0x2bd   :  { %428 = vst.msk [vmem:[#allocation3] sm:$0xff] %vm182_vm1, %v417_v16  ;;  %v712_v17 = vpop.f32.mrb[4].mxu0 }
 0x2be   :  { %v389_v18 = vpop.f32.mrb[5].mxu0 }
 0x2bf   :  { %v713_v19 = vpop.f32.mrb[6].mxu0 }
 0x2c0   :  { %v407_v20 = vpack.c.bf16 %v713_v19, %v712_v17  ;;  %v392_v21 = vpop.f32.mrb[7].mxu0 }
 0x2c1   :  { %v406_v22 = vpack.c.bf16 %v392_v21, %v389_v18 }
 0x2c2   :  { %411 = vst.msk [vmem:[#allocation3 + $0x18] sm:$0xff] %vm84_vm0, %v407_v20  ;;  %v433_v26 = vld [vmem:[#allocation3 + $0x8] sm:$0xff] }
 0x2c3   :  { %431 = vst.msk [vmem:[#allocation3 + $0x18] sm:$0xff] %vm182_vm1, %v423_v23 }
 0x2c4   :  { %410 = vst.msk [vmem:[#allocation3 + $0x10] sm:$0xff] %vm84_vm0, %v406_v22  ;;  %v432_v25 = vld [vmem:[#allocation3] sm:$0xff] }
 0x2c5   :  { %430 = vst.msk [vmem:[#allocation3 + $0x10] sm:$0xff] %vm182_vm1, %v421_v24  ;;  %730 = vmatprep.mubr.bf16.mxu0 %v432_v25 }
 0x2c6   :  { %731 = vmatmul.mubr.bf16.vlgmr.msra.gmra.mrb[8].mxu0 %v433_v26 }
 0x2ca   :  { %v435_v28 = vld [vmem:[#allocation3 + $0x18] sm:$0xff] }
 0x2cc   :  { %v434_v27 = vld [vmem:[#allocation3 + $0x10] sm:$0xff] }
 0x2cd   :  { %734 = vmatprep.mubr.bf16.mxu0 %v434_v27 }
 0x2ce   :  { %735 = vmatmul.mubr.bf16.gmra.mrb[12].mxu0 %v435_v28 }
 0x399   :  { %v732_v30 = vpop.f32.mrb[8].mxu0 }
 0x39a   :  { %v550_v31 = vadd.f32 %v732_v30, %v609_v29  ;;  %v541_v32 = vpop.f32.mrb[9].mxu0 }
 0x39b   :  { %v542_v33 = vadd.f32 %v609_v29, %v541_v32  ;;  %v733_v34 = vpop.f32.mrb[10].mxu0 }
 0x39c   :  { %574 = vst [vmem:[%s951_s6 + $0x10] sm:$0xff] %v550_v31  ;;  %v553_v35 = vadd.f32 %v733_v34, %v609_v29  ;;  %v544_v36 = vpop.f32.mrb[11].mxu0 }
 0x39d   :  { %572 = vst [vmem:[%s951_s6] sm:$0xff] %v542_v33  ;;  %v545_v37 = vadd.f32 %v609_v29, %v544_v36 }
 0x39e   :  { %575 = vst [vmem:[%s951_s6 + $0x18] sm:$0xff] %v553_v35 }
 0x39f   :  { %573 = vst [vmem:[%s951_s6 + $0x8] sm:$0xff] %v545_v37 }
 0x3a1   :  { %v736_v38 = vpop.f32.mrb[12].mxu0 }
 0x3a2   :  { %v566_v39 = vadd.f32 %v736_v38, %v609_v29  ;;  %v557_v40 = vpop.f32.mrb[13].mxu0 }
 0x3a3   :  { %v558_v41 = vadd.f32 %v609_v29, %v557_v40  ;;  %v737_v42 = vpop.f32.mrb[14].mxu0 }
 0x3a4   :  { %578 = vst [vmem:[%s951_s6 + $0x30] sm:$0xff] %v566_v39  ;;  %v569_v43 = vadd.f32 %v737_v42, %v609_v29  ;;  %v560_v44 = vpop.f32.mrb[15].mxu0 }
 0x3a5   :  { %576 = vst [vmem:[%s951_s6 + $0x20] sm:$0xff] %v558_v41  ;;  %v561_v45 = vadd.f32 %v609_v29, %v560_v44 }
 0x3a6   :  { %579 = vst [vmem:[%s951_s6 + $0x38] sm:$0xff] %v569_v43 }
 0x3a7   :  { %577 = vst [vmem:[%s951_s6 + $0x28] sm:$0xff] %v561_v45 }

</bundles_post_ra>
